<compile_context>
chip_gen: v6e
topology: v6e:2x2x1
jax: 0.10.0
libtpu: 0.0.40
codegen_flags: <defaults>
</compile_context>

<pallas_src>
import functools

import jax
import jax.numpy as jnp
from jax.experimental import pallas as pl
from jax.experimental.pallas import tpu as pltpu

VOCAB = 36
EMB = 8
PIECE_OUT = 7
INFO_OUT = 4
LANE = 128


def _round_up(x, m):
    return ((x + m - 1) // m) * m


def _board_emb_kernel(idx_ref, wp_ref, wi_ref, piece_ref, info_ref):
    """One tile: (1, T) indices -> (7, T) piece and (4, T) info (transposed)."""
    t = idx_ref.shape[1]
    idx = idx_ref[...]                                               # (1, T) int32
    vocab_iota = jax.lax.broadcasted_iota(jnp.int32, (VOCAB, t), 0)  # sublane iota
    one_hot = (idx == vocab_iota).astype(jnp.float32)                # (36, T)
    # Two lane-dense MXU pushes: gather + linear head + bias fused per matmul.
    piece_ref[...] = jnp.dot(wp_ref[...], one_hot,
                             preferred_element_type=jnp.float32)     # (7, T)
    info_ref[...] = jnp.dot(wi_ref[...], one_hot,
                            preferred_element_type=jnp.float32)      # (4, T)


def board_emb_train_net(x, emb_table, w_piece, b_piece, w_info, b_info, *,
                        tile=16384, min_pallas_rows=4096):
    """x: integer indices of shape (B, S). Returns (piece (B,S,7), info (B,S,4))."""
    B, S = x.shape
    N = B * S

    emb_table = jnp.asarray(emb_table, jnp.float32)          # (36, 8)
    w_piece = jnp.asarray(w_piece, jnp.float32)              # (7, 8)
    b_piece = jnp.asarray(b_piece, jnp.float32)              # (7,)
    w_info = jnp.asarray(w_info, jnp.float32)                # (4, 8)
    b_info = jnp.asarray(b_info, jnp.float32)                # (4,)

    # --- Small-N fallback: plain XLA gather + matmul beats kernel launch cost.
    if N < min_pallas_rows:
        emb = emb_table[x]                                   # (B, S, 8)
        return emb @ w_piece.T + b_piece, emb @ w_info.T + b_info

    # --- Weight/bias fusion (wrapper-side, runs once under jit) --------------
    # Exactly one one-hot element is 1 per column, so adding the bias to every
    # fused-table column is identical to adding it after the matmul.
    emb_t = emb_table.T                                      # (8, 36)
    wp_fused = w_piece @ emb_t + b_piece[:, None]            # (7, 36)
    wi_fused = w_info @ emb_t + b_info[:, None]              # (4, 36)

    # --- Tiling over N (lane axis) -------------------------------------------
    tile = _round_up(max(tile, LANE), LANE)
    # >= 2 grid steps for moderate N so v7x's two TensorCores both get work.
    t = min(tile, _round_up(pl.cdiv(N, 2), LANE))
    grid = pl.cdiv(N, t)
    n_pad = grid * t

    idx = x.reshape(N).astype(jnp.int32)
    idx = jnp.pad(idx, (0, n_pad - N)).reshape(1, n_pad)     # pad cols discarded

    piece_t, info_t = pl.pallas_call(
        _board_emb_kernel,
        out_shape=(
            jax.ShapeDtypeStruct((PIECE_OUT, n_pad), jnp.float32),
            jax.ShapeDtypeStruct((INFO_OUT, n_pad), jnp.float32),
        ),
        grid=(grid,),
        in_specs=[
            pl.BlockSpec((1, t), lambda i: (0, i)),                 # idx (lane-dense)
            pl.BlockSpec((PIECE_OUT, VOCAB), lambda i: (0, 0)),     # fused piece table
            pl.BlockSpec((INFO_OUT, VOCAB), lambda i: (0, 0)),      # fused info table
        ],
        out_specs=(
            pl.BlockSpec((PIECE_OUT, t), lambda i: (0, i)),
            pl.BlockSpec((INFO_OUT, t), lambda i: (0, i)),
        ),
        compiler_params=pltpu.CompilerParams(
            dimension_semantics=("parallel",)),
    )(idx, wp_fused, wi_fused)

    # Single fused slice+transpose+reshape per head back to the module layout.
    piece = piece_t[:, :N].T.reshape(B, S, PIECE_OUT)
    info = info_t[:, :N].T.reshape(B, S, INFO_OUT)
    return piece, info


if __name__ == "__main__":
    key = jax.random.PRNGKey(0)
    k_x1, k_x2, k_emb, k_wp, k_bp, k_wi, k_bi = jax.random.split(key, 7)

    # Deterministic synthetic parameters (no checkpoint).
    emb_table = jax.random.normal(k_emb, (VOCAB, EMB), jnp.float32)
    w_piece = jax.random.normal(k_wp, (PIECE_OUT, EMB), jnp.float32) * 0.1
    b_piece = jax.random.normal(k_bp, (PIECE_OUT,), jnp.float32) * 0.1
    w_info = jax.random.normal(k_wi, (INFO_OUT, EMB), jnp.float32) * 0.1
    b_info = jax.random.normal(k_bi, (INFO_OUT,), jnp.float32) * 0.1

    def ref_fn(x):
        emb = emb_table[x]                                   # (B, S, 8)
        return emb @ w_piece.T + b_piece, emb @ w_info.T + b_info

    # Force the Pallas path even at demo sizes (production would keep the
    # default fallback threshold).
    fwd = jax.jit(functools.partial(board_emb_train_net, min_pallas_rows=0))

    # Case 1: batch=2 boards of 64 squares -> N=128, single grid step.
    x1 = jax.random.randint(k_x1, (2, 64), 0, VOCAB, dtype=jnp.int32)
    piece1, info1 = fwd(x1, emb_table, w_piece, b_piece, w_info, b_info)
    jax.block_until_ready((piece1, info1))
    p_ref1, i_ref1 = ref_fn(x1)
    assert piece1.shape == (2, 64, PIECE_OUT) and info1.shape == (2, 64, INFO_OUT)
    assert jnp.allclose(piece1, p_ref1, atol=1e-4), float(
        jnp.max(jnp.abs(piece1 - p_ref1)))
    assert jnp.allclose(info1, i_ref1, atol=1e-4), float(
        jnp.max(jnp.abs(info1 - i_ref1)))

    # Case 2: N=320 -> 2 grid steps + padded tail (exercises tiling / padding).
    x2 = jax.random.randint(k_x2, (5, 64), 0, VOCAB, dtype=jnp.int32)
    piece2, info2 = fwd(x2, emb_table, w_piece, b_piece, w_info, b_info)
    jax.block_until_ready((piece2, info2))
    p_ref2, i_ref2 = ref_fn(x2)
    assert jnp.allclose(piece2, p_ref2, atol=1e-4), float(
        jnp.max(jnp.abs(piece2 - p_ref2)))
    assert jnp.allclose(info2, i_ref2, atol=1e-4), float(
        jnp.max(jnp.abs(info2 - i_ref2)))

    print("KERNEL_OK")
</pallas_src>

<mosaic_0001>
module attributes {stable_mosaic.version = 11 : i64} {
  func.func @_board_emb_kernel(%arg0: i32, %arg1: memref<1x128xi32, #tpu.memory_space<vmem>>, %arg2: memref<7x36xf32, #tpu.memory_space<vmem>>, %arg3: memref<4x36xf32, #tpu.memory_space<vmem>>, %arg4: memref<7x128xf32, #tpu.memory_space<vmem>>, %arg5: memref<4x128xf32, #tpu.memory_space<vmem>>) attributes {dimension_semantics = [#tpu.dimension_semantics<parallel>], iteration_bounds = array<i64: 1>, scalar_prefetch = 0 : i64, scratch_operands = 0 : i64, tpu.core_type = #tpu.core_type<tc>, window_params = [{transform_indices = @transform_0, window_bounds = array<i64: 1, 128>}, {pipeline_mode = #tpu.pipeline_mode<synchronous>, transform_indices = @transform_1, window_bounds = array<i64: 7, 36>}, {pipeline_mode = #tpu.pipeline_mode<synchronous>, transform_indices = @transform_2, window_bounds = array<i64: 4, 36>}, {transform_indices = @transform_3, window_bounds = array<i64: 7, 128>}, {transform_indices = @transform_4, window_bounds = array<i64: 4, 128>}]} {
    %c0 = arith.constant 0 : index
    %c0_0 = arith.constant 0 : index
    %0 = vector.load %arg1[%c0, %c0_0] : memref<1x128xi32, #tpu.memory_space<vmem>>, vector<1x128xi32>
    %1 = tpu.iota {dimensions = array<i32: 0>} : vector<36x128xi32>
    %2 = vector.broadcast %0 : vector<1x128xi32> to vector<36x128xi32>
    %3 = arith.cmpi eq, %2, %1 : vector<36x128xi32>
    %4 = arith.extui %3 : vector<36x128xi1> to vector<36x128xi32>
    %5 = arith.sitofp %4 : vector<36x128xi32> to vector<36x128xf32>
    %c0_1 = arith.constant 0 : index
    %c0_2 = arith.constant 0 : index
    %6 = vector.load %arg2[%c0_1, %c0_2] : memref<7x36xf32, #tpu.memory_space<vmem>>, vector<7x36xf32>
    %cst = arith.constant dense<0.000000e+00> : vector<7x128xf32>
    %7 = tpu.matmul %6, %5, %cst {dimension_numbers = #tpu.dot_dimension_numbers<[1], [0], [0], [1], [0, 0, 1, 1], [], []>} : vector<7x36xf32>, vector<36x128xf32>, vector<7x128xf32> -> vector<7x128xf32>
    %c0_3 = arith.constant 0 : index
    %c0_4 = arith.constant 0 : index
    %8 = vector.load %arg4[%c0_3, %c0_4] : memref<7x128xf32, #tpu.memory_space<vmem>>, vector<7x128xf32>
    tpu.vector_store %arg4[%c0_3, %c0_4], %7 {strides = array<i32>} : memref<7x128xf32, #tpu.memory_space<vmem>>, vector<7x128xf32>,
    %c0_5 = arith.constant 0 : index
    %c0_6 = arith.constant 0 : index
    %9 = vector.load %arg3[%c0_5, %c0_6] : memref<4x36xf32, #tpu.memory_space<vmem>>, vector<4x36xf32>
    %cst_7 = arith.constant dense<0.000000e+00> : vector<4x128xf32>
    %10 = tpu.matmul %9, %5, %cst_7 {dimension_numbers = #tpu.dot_dimension_numbers<[1], [0], [0], [1], [0, 0, 1, 1], [], []>} : vector<4x36xf32>, vector<36x128xf32>, vector<4x128xf32> -> vector<4x128xf32>
    %c0_8 = arith.constant 0 : index
    %c0_9 = arith.constant 0 : index
    %11 = vector.load %arg5[%c0_8, %c0_9] : memref<4x128xf32, #tpu.memory_space<vmem>>, vector<4x128xf32>
    tpu.vector_store %arg5[%c0_8, %c0_9], %10 {strides = array<i32>} : memref<4x128xf32, #tpu.memory_space<vmem>>, vector<4x128xf32>,
    return
  }
  func.func @transform_0(%arg0: i32) -> (i32, i32) {
    %c0_i32 = arith.constant 0 : i32
    %c0_i32_0 = arith.constant 0 : i32
    return %c0_i32, %arg0 : i32, i32
  }
  func.func @transform_1(%arg0: i32) -> (i32, i32) {
    %c0_i32 = arith.constant 0 : i32
    %c0_i32_0 = arith.constant 0 : i32
    %c0_i32_1 = arith.constant 0 : i32
    return %c0_i32, %c0_i32_0 : i32, i32
  }
  func.func @transform_2(%arg0: i32) -> (i32, i32) {
    %c0_i32 = arith.constant 0 : i32
    %c0_i32_0 = arith.constant 0 : i32
    %c0_i32_1 = arith.constant 0 : i32
    return %c0_i32, %c0_i32_0 : i32, i32
  }
  func.func @transform_3(%arg0: i32) -> (i32, i32) {
    %c0_i32 = arith.constant 0 : i32
    %c0_i32_0 = arith.constant 0 : i32
    return %c0_i32, %arg0 : i32, i32
  }
  func.func @transform_4(%arg0: i32) -> (i32, i32) {
    %c0_i32 = arith.constant 0 : i32
    %c0_i32_0 = arith.constant 0 : i32
    return %c0_i32, %arg0 : i32, i32
  }
}

</mosaic_0001>

<bundles_post_ra>
// kernel: board_emb_train_net.1
= control target key start
LH: loop header
LB: loop body
LE: loop exit
PB: predicated region body
PF: predicated region fallthrough
CT: control target
= control target key end

     0   :  { %v17_v0 = vlaneseq  ;;  %v264_v1 = vmov 0.0   ;;  %vm265_vm0 = vmmov 0   ;;  %vm47_vm1 = vcmask 1043456   ;;  %s307_s0 = inlined_call_operand.vmem [shape: s32[1,128], index: 0, kind: input, shape index: {}]   ;;  %s308_s1 = inlined_call_operand.vmem [shape: f32[7,36], index: 1, kind: input, shape index: {}]   ;;  %s309_s2 = inlined_call_operand.vmem [shape: f32[4,36], index: 2, kind: input, shape index: {}]   ;;  %s310_s3 = inlined_call_operand.vmem [shape: f32[7,128], index: 3, kind: output, shape index: {0}]   ;;  %s311_s4 = inlined_call_operand.vmem [shape: f32[4,128], index: 4, kind: output, shape index: {1}]  }
   0x1   :  { %235 = vmatprep.subr.mxu0 %v264_v1  ;;  %248 = vmatprep.subr.mxu1 %v264_v1  ;;  %v205_v3 = vld [vmem:[%s307_s0] ss:$0 sm:$0xff]  ;;  %v266_v9 = vmov 1.0   ;;  %vm43_vm7 = vcmask 293888  }
   0x2   :  { %v18_v2 = vshrl.u32 %v17_v0, 7  ;;  %245 = vmatprep.mubr.msk.f32.mxu0 %vm265_vm0, %v264_v1  ;;  %258 = vmatprep.mubr.msk.f32.mxu1 %vm265_vm0, %v264_v1  ;;  %v42_v10 = vld [vmem:[%s308_s1] sm:$0x7f] }
   0x3   :  { %v122_v11 = vld [vmem:[%s309_s2] sm:$0xf] }
   0x4   :  { %v22_v4 = vadd.s32 32, %v18_v2  ;;  %v21_v5 = vadd.s32 24, %v18_v2  ;;  %v20_v6 = vadd.s32 16, %v18_v2  ;;  %v19_v8 = vadd.s32 8, %v18_v2 }
   0x5   :  { %vm27_vm6 = vcmp.eq.s32.totalorder %v205_v3, %v18_v2 }
   0x6   :  { %vm31_vm2 = vcmp.eq.s32.totalorder %v205_v3, %v22_v4  ;;  %vm30_vm3 = vcmp.eq.s32.totalorder %v205_v3, %v21_v5  ;;  %vm29_vm4 = vcmp.eq.s32.totalorder %v205_v3, %v20_v6  ;;  %vm28_vm5 = vcmp.eq.s32.totalorder %v205_v3, %v19_v8 }
   0x7   :  { %v210_v7 = vsel %vm31_vm2, 1.0, %v264_v1 }
   0x8   :  { %236 = vmatpush3.msk.msra.mxu0 %vm47_vm1, %v210_v7  ;;  %249 = vmatpush3.msk.msra.mxu1 %vm47_vm1, %v210_v7 }
   0x9   :  { %237 = vmatprep.subr.mxu0 %v264_v1  ;;  %250 = vmatprep.subr.mxu1 %v264_v1 }
   0xa   :  { %238 = vmatpush3.msk.msra.mxu0 %vm30_vm3, %v266_v9  ;;  %251 = vmatpush3.msk.msra.mxu1 %vm30_vm3, %v266_v9 }
   0xb   :  { %239 = vmatprep.subr.mxu0 %v264_v1  ;;  %252 = vmatprep.subr.mxu1 %v264_v1 }
   0xc   :  { %240 = vmatpush3.msk.msra.mxu0 %vm29_vm4, %v266_v9  ;;  %253 = vmatpush3.msk.msra.mxu1 %vm29_vm4, %v266_v9 }
   0xd   :  { %241 = vmatprep.subr.mxu0 %v264_v1  ;;  %254 = vmatprep.subr.mxu1 %v264_v1 }
   0xe   :  { %242 = vmatpush3.msk.msra.mxu0 %vm28_vm5, %v266_v9  ;;  %255 = vmatpush3.msk.msra.mxu1 %vm28_vm5, %v266_v9 }
   0xf   :  { %243 = vmatprep.subr.mxu0 %v264_v1  ;;  %256 = vmatprep.subr.mxu1 %v264_v1 }
  0x10   :  { %244 = vmatpush3.msk.msra.mxu0 %vm27_vm6, %v266_v9  ;;  %257 = vmatpush3.msk.msra.mxu1 %vm27_vm6, %v266_v9 }
  0x11   :  { %246 = vmatmul.mubr.msk.f32.vlgmr.msra.gmra.mxu0 %vm43_vm7, %v42_v10  ;;  %259 = vmatmul.mubr.msk.f32.vlgmr.msra.gmra.mxu1 %vm43_vm7, %v122_v11 }
  0xd1   :  { %v117_v12 = vpop.f32.mrf.mxu0  ;;  %v192_v13 = vpop.f32.mrf.mxu1 }
  0xd2   :  { %121 = vst [vmem:[%s310_s3] sm:$0x7f] %v117_v12  ;;  %196 = vst [vmem:[%s311_s4] sm:$0xf] %v192_v13 }
  0xd3   :  { %v247_v14 = vpop.f32.mrf.mxu0  ;;  %v260_v15 = vpop.f32.mrf.mxu1 }

</bundles_post_ra>
